<compile_context>
chip_gen: v7x
topology: tpu7x:2x2x1
jax: 0.10.0
libtpu: 0.0.40
codegen_flags: <defaults>
</compile_context>

<pallas_src>
import jax
import jax.numpy as jnp
from jax.experimental import pallas as pl
from jax.experimental.pallas import tpu as pltpu


def _upconv_phase_kernel(x_ref, xh_ref, w_ref, b_ref, y_ref, sum_ref, sumsq_ref):
    """One (batch, row-tile) step of the phase-decomposed stride-2 transposed conv.

    x_ref   : (1, TH, W+1, Cin)  bf16  input rows [t*TH, (t+1)*TH), right col zero-padded
    xh_ref  : (1, 1,  W+1, Cin)  bf16  halo row (t+1)*TH (zero pad row for the last tile)
    w_ref   : (4*Cin, 4*Cout)    bf16  fused tap->phase weight matrix
    b_ref   : (1, 4*Cout)        f32   bias tiled over the 4 output phases
    y_ref   : (1, TH*W, 4*Cout)  bf16  phase-layout conv output (lane-dense channel axis)
    sum_ref / sumsq_ref : (1, 1, Cout) f32 per-tile partial BatchNorm statistics
    """
    _, TH, Wp1, Cin = x_ref.shape
    W = Wp1 - 1
    Cout = w_ref.shape[1] // 4

    # rows [t*TH, (t+1)*TH]  (body tile + 1 halo row)
    xh = jnp.concatenate([x_ref[0], xh_ref[0]], axis=0)          # (TH+1, W+1, Cin)

    # the four shifted taps (da, db) in {0,1}^2, concatenated on the lane axis -> im2col slab
    patch = jnp.concatenate(
        [xh[:TH, :W, :], xh[:TH, 1:, :], xh[1:, :W, :], xh[1:, 1:, :]], axis=-1
    ).reshape(TH * W, 4 * Cin)

    # single fused MXU matmul (bf16 operands, f32 accumulation), columns = (phase, channel)
    acc = jnp.dot(patch, w_ref[...], preferred_element_type=jnp.float32)   # (TH*W, 4*Cout)
    acc = acc + b_ref[...]

    # per-channel partial stats in f32 (before the bf16 store), folding the 4 phases
    def _fold_phases(v):                                          # (1, 4*Cout) -> (1, Cout)
        return (v[:, 0:Cout] + v[:, Cout:2 * Cout]
                + v[:, 2 * Cout:3 * Cout] + v[:, 3 * Cout:4 * Cout])

    sum_ref[0] = _fold_phases(jnp.sum(acc, axis=0, keepdims=True))
    sumsq_ref[0] = _fold_phases(jnp.sum(acc * acc, axis=0, keepdims=True))

    y_ref[0] = acc.astype(y_ref.dtype)


def _bn_relu_kernel(y_ref, scale_ref, shift_ref, o_ref):
    """Folded BatchNorm (precomputed per-channel scale/shift) + ReLU on a lane-dense slab."""
    y = y_ref[0].astype(jnp.float32)                              # (TH*W, 4*Cout)
    o_ref[0] = jnp.maximum(y * scale_ref[...] + shift_ref[...], 0.0).astype(o_ref.dtype)


def _fused_phase_weight(w_pt):
    """(Cin, Cout, 3, 3) ConvTranspose2d weight -> (4*Cin, 4*Cout) tap->phase matrix.

    Row block (da, db): input tap x[a+da, b+db].  Column block (ry, rx): output phase
    (oy, ox) = (2a+ry, 2b+rx).  Tap (da, db) feeds phase (ry, rx) through kernel element
    (ky, kx) = (ry+1-2*da, rx+1-2*db) when in range, else the block is zero.
    """
    Cin, Cout = w_pt.shape[0], w_pt.shape[1]
    w = w_pt.astype(jnp.float32)
    zeros = jnp.zeros((Cin, Cout), jnp.float32)
    rows = []
    for da in (0, 1):
        for db in (0, 1):
            cols = []
            for ry in (0, 1):
                for rx in (0, 1):
                    ky, kx = ry + 1 - 2 * da, rx + 1 - 2 * db
                    cols.append(w[:, :, ky, kx] if 0 <= ky <= 2 and 0 <= kx <= 2 else zeros)
            rows.append(jnp.concatenate(cols, axis=1))
    return jnp.concatenate(rows, axis=0)                          # (4*Cin, 4*Cout)


def _pick_row_tile(H, W, Cin, Cout, row_tile=None):
    """Row tile TH with TH | H and (TH % 8 == 0 or TH == H) so output blocks obey the
    (8, 128) sublane rule; default sized so per-step tiles stay ~<= 8 MiB (fits
    double-buffered in v7x's 64 MiB VMEM; v5e/v6e 128 MiB parts have extra headroom)."""
    if row_tile is None:
        per_row = W * 4 * (2 * Cin + 6 * Cout) + (W + 1) * 2 * Cin
        row_tile = max(8, (8 * 2 ** 20) // max(per_row, 1))
    th = min(H, row_tile)
    if th >= H:
        return H
    th = max(8, (th // 8) * 8)
    while th > 8 and H % th != 0:
        th -= 8
    return th if H % th == 0 else H


def _compiler_params(block_bytes):
    # per-tile partial stats -> both grid axes are data-parallel (both v7x TensorCores usable)
    limit = int(min(64 * 2 ** 20, max(16 * 2 ** 20, 6 * block_bytes)))
    return pltpu.CompilerParams(dimension_semantics=("parallel", "parallel"),
                                vmem_limit_bytes=limit)


def upconv_forward(x_nchw, w_pt, b, gamma, beta, eps=1e-5, row_tile=None):
    """UpConv.forward with deconv_flag=True, normalization='bn' (train mode), activation='relu'.
    w_pt has PyTorch ConvTranspose2d layout (Cin, Cout, 3, 3)."""
    N, Cin, H, W = x_nchw.shape
    Cout = w_pt.shape[1]
    Ho, Wo = 2 * H, 2 * W
    TH = _pick_row_tile(H, W, Cin, Cout, row_tile)
    T = H // TH
    C4 = 4 * Cout                              # fused (phase, channel) lane axis

    # NCHW -> NHWC in bf16, plus one zero row/col on the bottom/right for the (a+1, b+1) taps
    x = jnp.transpose(x_nchw, (0, 2, 3, 1)).astype(jnp.bfloat16)
    xpad = jnp.pad(x, ((0, 0), (0, 1), (0, 1), (0, 0)))           # (N, H+1, W+1, Cin)

    wbig = _fused_phase_weight(w_pt).astype(jnp.bfloat16)         # (4*Cin, 4*Cout)
    bbig = jnp.tile(b.astype(jnp.float32), 4).reshape(1, C4)

    p1_bytes = (TH * (W + 1) * Cin * 2 + TH * W * 4 * Cin * 2 + 16 * Cin * Cout * 2
                + TH * W * C4 * 4 + TH * W * C4 * 2)
    y, psum, psumsq = pl.pallas_call(
        _upconv_phase_kernel,
        out_shape=(
            jax.ShapeDtypeStruct((N, H * W, C4), jnp.bfloat16),   # conv output, phase layout
            jax.ShapeDtypeStruct((N * T, 1, Cout), jnp.float32),  # partial sums
            jax.ShapeDtypeStruct((N * T, 1, Cout), jnp.float32),  # partial sums of squares
        ),
        grid=(N, T),
        in_specs=[
            # body rows [t*TH, (t+1)*TH)
            pl.BlockSpec((1, TH, W + 1, Cin), lambda n, t: (n, t, 0, 0)),
            # halo row (t+1)*TH (same array passed twice; block size 1 -> element row index)
            pl.BlockSpec((1, 1, W + 1, Cin), lambda n, t: (n, (t + 1) * TH, 0, 0)),
            pl.BlockSpec((4 * Cin, C4), lambda n, t: (0, 0)),
            pl.BlockSpec((1, C4), lambda n, t: (0, 0)),
        ],
        out_specs=(
            pl.BlockSpec((1, TH * W, C4), lambda n, t: (n, t, 0)),
            pl.BlockSpec((1, 1, Cout), lambda n, t: (n * T + t, 0, 0)),
            pl.BlockSpec((1, 1, Cout), lambda n, t: (n * T + t, 0, 0)),
        ),
        compiler_params=_compiler_params(p1_bytes),
    )(xpad, xpad, wbig, bbig)

    # BatchNorm training-mode statistics (biased variance), folded once into scale/shift
    count = float(N * Ho * Wo)
    tot = jnp.sum(psum.reshape(N * T, Cout), axis=0)
    totsq = jnp.sum(psumsq.reshape(N * T, Cout), axis=0)
    mean = tot / count
    var = jnp.maximum(totsq / count - mean * mean, 0.0)
    scale = gamma.astype(jnp.float32) * jax.lax.rsqrt(var + eps)
    shift = beta.astype(jnp.float32) - mean * scale
    scale_l = jnp.tile(scale, 4).reshape(1, C4)
    shift_l = jnp.tile(shift, 4).reshape(1, C4)

    p2_bytes = TH * W * C4 * (2 + 4) + 2 * C4 * 4
    out_flat = pl.pallas_call(
        _bn_relu_kernel,
        out_shape=jax.ShapeDtypeStruct((N, H * W, C4), jnp.float32),
        grid=(N, T),
        in_specs=[
            pl.BlockSpec((1, TH * W, C4), lambda n, t: (n, t, 0)),
            pl.BlockSpec((1, C4), lambda n, t: (0, 0)),
            pl.BlockSpec((1, C4), lambda n, t: (0, 0)),
        ],
        out_specs=pl.BlockSpec((1, TH * W, C4), lambda n, t: (n, t, 0)),
        compiler_params=_compiler_params(p2_bytes),
    )(y, scale_l, shift_l)

    # untangle the phase layout with a single XLA transpose:
    # (n, a, b, ry, rx, c) -> out[n, c, 2a+ry, 2b+rx]
    out = out_flat.reshape(N, H, W, 2, 2, Cout)
    return jnp.transpose(out, (0, 5, 1, 3, 2, 4)).reshape(N, Cout, Ho, Wo)


if __name__ == "__main__":
    key = jax.random.PRNGKey(0)
    k1, k2, k3, k4, k5 = jax.random.split(key, 5)

    # small shapes consistent with the module: ch_in=4 -> ch_out=8, 16x16 -> 32x32
    N, Cin, Cout, H, W = 2, 4, 8, 16, 16
    x = jax.random.normal(k1, (N, Cin, H, W), jnp.float32)
    w = 0.1 * jax.random.normal(k2, (Cin, Cout, 3, 3), jnp.float32)  # ConvTranspose2d layout
    b = 0.1 * jax.random.normal(k3, (Cout,), jnp.float32)
    gamma = 1.0 + 0.1 * jax.random.normal(k4, (Cout,), jnp.float32)
    beta = 0.1 * jax.random.normal(k5, (Cout,), jnp.float32)
    # TODO(synk): BN running-stat (momentum) updates are a training-only side effect and are
    # not modeled; the train-mode forward output does not depend on them.

    # row_tile=8 exercises the multi-row-tile + halo path (H=16 -> 2 row tiles per sample)
    out = jax.block_until_ready(upconv_forward(x, w, b, gamma, beta, row_tile=8))
    assert out.shape == (N, Cout, 2 * H, 2 * W), out.shape

    # reference: ConvTranspose2d via lhs-dilated correlation using the same bf16-operand /
    # f32-accumulate MXU policy as the kernel, then train-mode BatchNorm (biased var) + ReLU.
    rhs = jnp.transpose(w[:, :, ::-1, ::-1], (1, 0, 2, 3))           # (Cout, Cin, 3, 3)
    ref = jax.lax.conv_general_dilated(
        x.astype(jnp.bfloat16), rhs.astype(jnp.bfloat16),
        window_strides=(1, 1), padding=((1, 2), (1, 2)), lhs_dilation=(2, 2),
        dimension_numbers=("NCHW", "OIHW", "NCHW"),
        preferred_element_type=jnp.float32)
    ref = ref + b[None, :, None, None]
    mean = ref.mean(axis=(0, 2, 3), keepdims=True)
    var = ref.var(axis=(0, 2, 3), keepdims=True)                     # biased, as in PyTorch BN
    ref = (ref - mean) * jax.lax.rsqrt(var + 1e-5) * gamma[None, :, None, None] \
        + beta[None, :, None, None]
    ref = jnp.maximum(ref, 0.0)

    err = float(jnp.max(jnp.abs(out - ref)))
    assert jnp.allclose(out, ref, atol=3e-2, rtol=3e-2), f"max abs err {err}"
    print("KERNEL_OK")
</pallas_src>

<mosaic_0001>
module attributes {stable_mosaic.version = 11 : i64} {
  func.func @_upconv_phase_kernel(%arg0: i32, %arg1: i32, %arg2: memref<1x8x17x4xbf16, #tpu.memory_space<vmem>>, %arg3: memref<1x1x17x4xbf16, #tpu.memory_space<vmem>>, %arg4: memref<16x32xbf16, #tpu.memory_space<vmem>>, %arg5: memref<1x32xf32, #tpu.memory_space<vmem>>, %arg6: memref<1x128x32xbf16, #tpu.memory_space<vmem>>, %arg7: memref<1x1x8xf32, #tpu.memory_space<vmem>>, %arg8: memref<1x1x8xf32, #tpu.memory_space<vmem>>) attributes {dimension_semantics = [#tpu.dimension_semantics<parallel>, #tpu.dimension_semantics<parallel>], iteration_bounds = array<i64: 2, 2>, scalar_prefetch = 0 : i64, scratch_operands = 0 : i64, tpu.core_type = #tpu.core_type<tc>, window_params = [{transform_indices = @transform_0, window_bounds = array<i64: 1, 8, 17, 4>}, {transform_indices = @transform_1, window_bounds = array<i64: 1, 1, 17, 4>}, {pipeline_mode = #tpu.pipeline_mode<synchronous>, transform_indices = @transform_2, window_bounds = array<i64: 16, 32>}, {pipeline_mode = #tpu.pipeline_mode<synchronous>, transform_indices = @transform_3, window_bounds = array<i64: 1, 32>}, {transform_indices = @transform_4, window_bounds = array<i64: 1, 128, 32>}, {transform_indices = @transform_5, window_bounds = array<i64: 1, 1, 8>}, {transform_indices = @transform_6, window_bounds = array<i64: 1, 1, 8>}]} {
    %c0 = arith.constant 0 : index
    %c0_0 = arith.constant 0 : index
    %c0_1 = arith.constant 0 : index
    %c0_2 = arith.constant 0 : index
    %0 = vector.load %arg2[%c0, %c0_0, %c0_1, %c0_2] : memref<1x8x17x4xbf16, #tpu.memory_space<vmem>>, vector<1x8x17x4xbf16>
    %1 = vector.shape_cast %0 : vector<1x8x17x4xbf16> to vector<8x17x4xbf16>
    %c0_3 = arith.constant 0 : index
    %c0_4 = arith.constant 0 : index
    %c0_5 = arith.constant 0 : index
    %c0_6 = arith.constant 0 : index
    %2 = vector.load %arg3[%c0_3, %c0_4, %c0_5, %c0_6] : memref<1x1x17x4xbf16, #tpu.memory_space<vmem>>, vector<1x1x17x4xbf16>
    %3 = vector.shape_cast %2 : vector<1x1x17x4xbf16> to vector<1x17x4xbf16>
    %4 = tpu.concatenate %1, %3 in 0 : vector<8x17x4xbf16>, vector<1x17x4xbf16> -> vector<9x17x4xbf16>
    %5 = vector.extract_strided_slice %4 {offsets = [0, 0, 0], sizes = [8, 16, 4], strides = [1, 1, 1]} : vector<9x17x4xbf16> to vector<8x16x4xbf16>
    %6 = vector.extract_strided_slice %4 {offsets = [0, 1, 0], sizes = [8, 16, 4], strides = [1, 1, 1]} : vector<9x17x4xbf16> to vector<8x16x4xbf16>
    %7 = vector.extract_strided_slice %4 {offsets = [1, 0, 0], sizes = [8, 16, 4], strides = [1, 1, 1]} : vector<9x17x4xbf16> to vector<8x16x4xbf16>
    %8 = vector.extract_strided_slice %4 {offsets = [1, 1, 0], sizes = [8, 16, 4], strides = [1, 1, 1]} : vector<9x17x4xbf16> to vector<8x16x4xbf16>
    %9 = tpu.concatenate %5, %6, %7, %8 in 2 : vector<8x16x4xbf16>, vector<8x16x4xbf16>, vector<8x16x4xbf16>, vector<8x16x4xbf16> -> vector<8x16x16xbf16>
    %10 = vector.shape_cast %9 : vector<8x16x16xbf16> to vector<128x16xbf16>
    %c0_7 = arith.constant 0 : index
    %c0_8 = arith.constant 0 : index
    %11 = vector.load %arg4[%c0_7, %c0_8] : memref<16x32xbf16, #tpu.memory_space<vmem>>, vector<16x32xbf16>
    %cst = arith.constant dense<0.000000e+00> : vector<128x32xf32>
    %12 = tpu.matmul %10, %11, %cst {dimension_numbers = #tpu.dot_dimension_numbers<[1], [0], [0], [1], [0, 0, 1, 1], [], []>} : vector<128x16xbf16>, vector<16x32xbf16>, vector<128x32xf32> -> vector<128x32xf32>
    %c0_9 = arith.constant 0 : index
    %c0_10 = arith.constant 0 : index
    %13 = vector.load %arg5[%c0_9, %c0_10] : memref<1x32xf32, #tpu.memory_space<vmem>>, vector<1x32xf32>
    %14 = vector.broadcast %13 : vector<1x32xf32> to vector<128x32xf32>
    %15 = arith.addf %12, %14 : vector<128x32xf32>
    %cst_11 = arith.constant dense<0.000000e+00> : vector<32xf32>
    %16 = vector.multi_reduction <add>, %15, %cst_11 [0] : vector<128x32xf32> to vector<32xf32>
    %17 = vector.shape_cast %16 : vector<32xf32> to vector<1x32xf32>
    %18 = vector.extract_strided_slice %17 {offsets = [0, 0], sizes = [1, 8], strides = [1, 1]} : vector<1x32xf32> to vector<1x8xf32>
    %19 = vector.extract_strided_slice %17 {offsets = [0, 8], sizes = [1, 8], strides = [1, 1]} : vector<1x32xf32> to vector<1x8xf32>
    %20 = arith.addf %18, %19 : vector<1x8xf32>
    %21 = vector.extract_strided_slice %17 {offsets = [0, 16], sizes = [1, 8], strides = [1, 1]} : vector<1x32xf32> to vector<1x8xf32>
    %22 = arith.addf %20, %21 : vector<1x8xf32>
    %23 = vector.extract_strided_slice %17 {offsets = [0, 24], sizes = [1, 8], strides = [1, 1]} : vector<1x32xf32> to vector<1x8xf32>
    %24 = arith.addf %22, %23 : vector<1x8xf32>
    %c0_12 = arith.constant 0 : index
    %c0_13 = arith.constant 0 : index
    %c0_14 = arith.constant 0 : index
    %25 = vector.load %arg7[%c0_12, %c0_13, %c0_14] : memref<1x1x8xf32, #tpu.memory_space<vmem>>, vector<1x1x8xf32>
    %26 = vector.shape_cast %25 : vector<1x1x8xf32> to vector<1x8xf32>
    %27 = vector.shape_cast %24 : vector<1x8xf32> to vector<1x1x8xf32>
    tpu.vector_store %arg7[%c0_12, %c0_13, %c0_14], %27 {strides = array<i32>} : memref<1x1x8xf32, #tpu.memory_space<vmem>>, vector<1x1x8xf32>,
    %28 = arith.mulf %15, %15 : vector<128x32xf32>
    %cst_15 = arith.constant dense<0.000000e+00> : vector<32xf32>
    %29 = vector.multi_reduction <add>, %28, %cst_15 [0] : vector<128x32xf32> to vector<32xf32>
    %30 = vector.shape_cast %29 : vector<32xf32> to vector<1x32xf32>
    %31 = vector.extract_strided_slice %30 {offsets = [0, 0], sizes = [1, 8], strides = [1, 1]} : vector<1x32xf32> to vector<1x8xf32>
    %32 = vector.extract_strided_slice %30 {offsets = [0, 8], sizes = [1, 8], strides = [1, 1]} : vector<1x32xf32> to vector<1x8xf32>
    %33 = arith.addf %31, %32 : vector<1x8xf32>
    %34 = vector.extract_strided_slice %30 {offsets = [0, 16], sizes = [1, 8], strides = [1, 1]} : vector<1x32xf32> to vector<1x8xf32>
    %35 = arith.addf %33, %34 : vector<1x8xf32>
    %36 = vector.extract_strided_slice %30 {offsets = [0, 24], sizes = [1, 8], strides = [1, 1]} : vector<1x32xf32> to vector<1x8xf32>
    %37 = arith.addf %35, %36 : vector<1x8xf32>
    %c0_16 = arith.constant 0 : index
    %c0_17 = arith.constant 0 : index
    %c0_18 = arith.constant 0 : index
    %38 = vector.load %arg8[%c0_16, %c0_17, %c0_18] : memref<1x1x8xf32, #tpu.memory_space<vmem>>, vector<1x1x8xf32>
    %39 = vector.shape_cast %38 : vector<1x1x8xf32> to vector<1x8xf32>
    %40 = vector.shape_cast %37 : vector<1x8xf32> to vector<1x1x8xf32>
    tpu.vector_store %arg8[%c0_16, %c0_17, %c0_18], %40 {strides = array<i32>} : memref<1x1x8xf32, #tpu.memory_space<vmem>>, vector<1x1x8xf32>,
    %41 = arith.truncf %15 : vector<128x32xf32> to vector<128x32xbf16>
    %c0_19 = arith.constant 0 : index
    %c0_20 = arith.constant 0 : index
    %c0_21 = arith.constant 0 : index
    %42 = vector.load %arg6[%c0_19, %c0_20, %c0_21] : memref<1x128x32xbf16, #tpu.memory_space<vmem>>, vector<1x128x32xbf16>
    %43 = vector.shape_cast %42 : vector<1x128x32xbf16> to vector<128x32xbf16>
    %44 = vector.shape_cast %41 : vector<128x32xbf16> to vector<1x128x32xbf16>
    tpu.vector_store %arg6[%c0_19, %c0_20, %c0_21], %44 {strides = array<i32>} : memref<1x128x32xbf16, #tpu.memory_space<vmem>>, vector<1x128x32xbf16>,
    return
  }
  func.func @transform_0(%arg0: i32, %arg1: i32) -> (i32, i32, i32, i32) {
    %c0_i32 = arith.constant 0 : i32
    %c0_i32_0 = arith.constant 0 : i32
    %c0_i32_1 = arith.constant 0 : i32
    return %arg0, %arg1, %c0_i32, %c0_i32_0 : i32, i32, i32, i32
  }
  func.func @transform_1(%arg0: i32, %arg1: i32) -> (i32, i32, i32, i32) {
    %c1_i32 = arith.constant 1 : i32
    %0 = arith.addi %arg1, %c1_i32 : i32
    %c8_i32 = arith.constant 8 : i32
    %1 = arith.muli %0, %c8_i32 : i32
    %c0_i32 = arith.constant 0 : i32
    %c0_i32_0 = arith.constant 0 : i32
    %c0_i32_1 = arith.constant 0 : i32
    return %arg0, %1, %c0_i32, %c0_i32_0 : i32, i32, i32, i32
  }
  func.func @transform_2(%arg0: i32, %arg1: i32) -> (i32, i32) {
    %c0_i32 = arith.constant 0 : i32
    %c0_i32_0 = arith.constant 0 : i32
    %c0_i32_1 = arith.constant 0 : i32
    return %c0_i32, %c0_i32_0 : i32, i32
  }
  func.func @transform_3(%arg0: i32, %arg1: i32) -> (i32, i32) {
    %c0_i32 = arith.constant 0 : i32
    %c0_i32_0 = arith.constant 0 : i32
    %c0_i32_1 = arith.constant 0 : i32
    return %c0_i32, %c0_i32_0 : i32, i32
  }
  func.func @transform_4(%arg0: i32, %arg1: i32) -> (i32, i32, i32) {
    %c0_i32 = arith.constant 0 : i32
    %c0_i32_0 = arith.constant 0 : i32
    return %arg0, %arg1, %c0_i32 : i32, i32, i32
  }
  func.func @transform_5(%arg0: i32, %arg1: i32) -> (i32, i32, i32) {
    %c2_i32 = arith.constant 2 : i32
    %0 = arith.muli %arg0, %c2_i32 : i32
    %1 = arith.addi %0, %arg1 : i32
    %c0_i32 = arith.constant 0 : i32
    %c0_i32_0 = arith.constant 0 : i32
    %c0_i32_1 = arith.constant 0 : i32
    return %1, %c0_i32, %c0_i32_0 : i32, i32, i32
  }
  func.func @transform_6(%arg0: i32, %arg1: i32) -> (i32, i32, i32) {
    %c2_i32 = arith.constant 2 : i32
    %0 = arith.muli %arg0, %c2_i32 : i32
    %1 = arith.addi %0, %arg1 : i32
    %c0_i32 = arith.constant 0 : i32
    %c0_i32_0 = arith.constant 0 : i32
    %c0_i32_1 = arith.constant 0 : i32
    return %1, %c0_i32, %c0_i32_0 : i32, i32, i32
  }
}

</mosaic_0001>

<bundles_post_ra>
// kernel: tpu_custom_call.1
= control target key start
LH: loop header
LB: loop body
LE: loop exit
PB: predicated region body
PF: predicated region fallthrough
CT: control target
= control target key end

     0   :  { %s2068_s0 = inlined_call_operand.vmem [shape: bf16[2,17,17,4], index: 0, kind: input, shape index: {}]   ;;  %s2069_s1 = inlined_call_operand.vmem [shape: bf16[2,17,17,4], index: 1, kind: input, shape index: {}]   ;;  %s2070_s2 = inlined_call_operand.vmem [shape: bf16[16,32], index: 2, kind: input, shape index: {}]   ;;  %s2071_s3 = inlined_call_operand.vmem [shape: f32[1,32], index: 3, kind: input, shape index: {}]   ;;  %s2072_s4 = inlined_call_operand.vmem [shape: bf16[2,256,32], index: 4, kind: output, shape index: {0}]   ;;  %s2073_s5 = inlined_call_operand.hbm [shape: f32[4,1,8], index: 5, kind: output, shape index: {1}]   ;;  %s2074_s6 = inlined_call_operand.hbm [shape: f32[4,1,8], index: 6, kind: output, shape index: {2}]  }
   0x1   :  { %2078 = sst [smem:[#allocation8_spill]] %s2068_s0 }
   0x2   :  { %12 = vsyncpa [#allocation3], 0 }
   0x3   :  { %14 = vsyncpa [#allocation3 + $0x1], 0 }
   0x4   :  { %15 = vsyncpa [#allocation5], 0 }
   0x5   :  { %17 = vsyncpa [#allocation5 + $0x1], 0  ;;  %s1642_s21 = smov 0   ;;  %s1644_s22 = smov 0  }
   0x6   :  { %s1646_s23 = smov 0   ;;  %s1648_s24 = smov 0  }
   0x7   :  { %s1650_s25 = smov 0   ;;  %s1652_s26 = smov 0  }
   0x8   :  { %s1654_s27 = smov 0   ;;  %s1656_s28 = smov 0  }
   0x9 LB: > { %s1248_s29 = sadd.s32 4294967295, %s1597_s28   ;;  %s32_s30 = sadd.s32 1, %s1589_s26  ;;  %s1597_s28 = sphi %s1656_s28, %s23_s28   ;;  %s1593_s27 = sphi %s1654_s27, %s2091_s27   ;;  %s1589_s26 = sphi %s1652_s26, %s2090_s26   ;;  %s1585_s25 = sphi %s1650_s25, %s2089_s25   ;;  %s1581_s24 = sphi %s1648_s24, %s2088_s24   ;;  %s1577_s23 = sphi %s1646_s23, %s2087_s23   ;;  %s1573_s22 = sphi %s1644_s22, %s2086_s22   ;;  %s1569_s21 = sphi %s1642_s21, %s2085_s21  }
   0xa   : > { %s35_s7 = sadd.s32 1, %s1593_s27  ;;  %p33_p0 = scmp.ge.s32.totalorder %s32_s30, 2 }
   0xb   : > { %s1252_s8 = sshll.u32 %s1593_s27, 1  ;;  %s1249_s9 = sadd.s32 4294967294, %s1597_s28  }
   0xc   : > { %s170_s10 = sadd.s32 %s1589_s26, %s1252_s8  ;;  %s2093_s30 = smov (%p33_p0, %s32_s30), 0 }
   0xd   : > { %s2095_s7 = smov (!%p33_p0, %s35_s7), %s1593_s27  ;;  %p186_p1 = scmp.ne.s32.totalorder %s1577_s23, %s1573_s22 }
   0xe   : > { %p187_p2 = scmp.eq.s32.totalorder %s1248_s29, 3  ;;  %p37_p3 = scmp.ge.s32.totalorder %s2095_s7, 2 }
   0xf   : > { %p192_p4 = scmp.ne.s32.totalorder %s1573_s22, %s1569_s21  ;;  %p193_p6 = scmp.eq.s32.totalorder %s1249_s9, 3 }
  0x10   : > { %p1695_p5 = por %p187_p2, %p186_p1  ;;  %s2097_s7 = smov (%p37_p3, %s2095_s7), 0 }
  0x11   : > { %p1701_p7 = por %p193_p6, %p192_p4  ;;  %p1258_p8 = scmp.ge.s32.totalorder %s1597_s28, 1 }
  0x12   : > { %s1253_s13 = sshll.u32 %s2097_s7, 1  ;;  %p287_p9 = scmp.lt.s32.totalorder %s1597_s28, 5 }
  0x13   : > { %s172_s14 = sadd.s32 %s1253_s13, %s2093_s30  ;;  %s176_s15 = sadd.s32 1, %s1577_s23 }
  0x14   : > { %s173_s16 = ssub.s32 %s170_s10, %s172_s14  ;;  %p288_p10 = pnand %p1258_p8, %p287_p9 }
  0x15   : > { %p174_p11 = scmp.eq.s32.totalorder %s173_s16, 0  ;;  %s1714_s18 = sshll.u32 (!%p288_p10), %s1581_s24, 3  ;;  %vm490_vm0 = vsmask.f32 (!%p288_p10), 7424  ;;  %v1470_v51 = vld [vmem:[%s2070_s2] sm:$0xff] (!%p288_p10)   ;;  %vm655_vm1 = vcmask (!%p288_p10), 31744  }
  0x16   : > { %291 = sbr.rel (%p288_p10) target bundleno = 601 (0x259), region = 36  ;;  %p356_p12 = scmp.lt.s32.totalorder (!%p288_p10), %s1585_s25, 1  ;;  %1347 = vmatprep.subr.bf16.mxu0 (!%p288_p10), %v1470_v51  ;;  %1365 = vmatprep.subr.bf16.mxu1 (!%p288_p10), %v1470_v51  ;;  %vm672_vm2 = vcmask (!%p288_p10), 64512   ;;  %vm689_vm3 = vcmask (!%p288_p10), 97280   ;;  %vm721_vm4 = vcmask (!%p288_p10), 130048   ;;  %vm1019_vm5 = vcmask (!%p288_p10), 257024  }
  0x17   : > { %s1711_s17 = scalar_select %p174_p11, %s1577_s23, %s176_s15  }
  0x18   : > { %p358_p13 = scmp.lt.s32.totalorder (!%p288_p10), %s1714_s18, 16  ;;  %s2081_s0 = sld [smem:[#allocation8_spill]] (!%p288_p10)  ;;  %1348 = vmatpush3.bf16.msra.mxu0 (!%p288_p10), %v1470_v51  ;;  %1366 = vmatpush3.bf16.msra.mxu1 (!%p288_p10), %v1470_v51  ;;  %vm835_vm6 = vcmask (!%p288_p10), 261120   ;;  %vm886_vm7 = vcmask (!%p288_p10), 57344  }
  0x19   : > { %s1321_s16 = sadd.s32 (!%p288_p10), 8, %s1714_s18 }
  0x1a   : > { %p1761_p0 = scmp.lt.s32.totalorder (!%p288_p10), %s1321_s16, 16 }
  0x1d   : > { %s1719_s19 = scalar_select %p356_p12, %s1585_s25, 1 }
  0x1e   : > { %s359_s20 = scalar_select %p358_p13, %s1714_s18, 16 }
  0x1f   : > { %s1368_s29 = smul.u32 51, %s1719_s19  ;;  %s2099_s16 = smov (!%p1761_p0, %s1321_s16), 16 }
  0x20   : > { %s1367_s8 = smul.u32 3, %s359_s20  ;;  %s2075_s20 = smov 8  }
  0x21   : > { %s1369_s18 = smul.u32 3, %s2099_s16 }
  0x22   : > { %s362_s9 = sadd.s32 %s1368_s29, %s1367_s8 }
  0x23   : > { %s1260_s10 = sshll.u32 %s362_s9, 2  ;;  %s1600_s9 = smov 4  }
  0x24   : > { %s1728_s15 = scalar_lea.vmem %s2081_s0, %s1260_s10  ;;  %s1601_s10 = smov 12  }
  0x25   : > { %v1731_v0 = vld [vmem:[%s1728_s15 + $0xc] sm:$0xff]   ;;  %v1734_v1 = vld [vmem:[%s1728_s15 + $0x24] sm:$0xff]   ;;  %v1740_v2 = vld [vmem:[%s1728_s15 + $0x18] sm:$0xff]   ;;  %s379_s8 = sadd.s32 %s1369_s18, %s1368_s29  ;;  %s2083_s29 = smov 8  }
  0x26   : > { %608 = vrot.lane.b32.xlu1 %v1731_v0, %s2075_s20  ;;  %v504_v3 = vshrl.u32 %v1731_v0, 16  ;;  %612 = vrot.lane.b32.xlu0 %v1734_v1, %s2075_s20  ;;  %v1746_v4 = vld [vmem:[%s1728_s15] sm:$0xff]   ;;  %v1456_v5 = vld [vmem:[%s1728_s15 + $0x8] ss:$0 sps:$4 sm:$0x11]   ;;  %v506_v7 = vshll.u32 %v1731_v0, 16 }
  0x27   : > { %v1750_v6 = vld [vmem:[%s1728_s15 + $0x30] sm:$0xff]   ;;  %v492_v8 = vshrl.u32 %v1746_v4, 16  ;;  %v494_v9 = vshll.u32 %v1746_v4, 16  ;;  %v499_v10 = vshll.u32 %v1456_v5, 16  ;;  %v516_v18 = vshrl.u32 %v1740_v2, 16  ;;  %v1773_v26 = vld [vmem:[%s1728_s15 + $0x3c] sm:$0xff]  }
  0x28   : > { %v1458_v11 = vld [vmem:[%s1728_s15 + $0x14] ss:$0 sps:$4 sm:$0x11]   ;;  %v508_v12 = vrot.slane %v506_v7, 1  ;;  %v518_v19 = vshll.u32 %v1740_v2, 16  ;;  %v528_v24 = vshrl.u32 %v1734_v1, 16 }
  0x29   : > { %v1459_v13 = vld [vmem:[%s1728_s15 + $0x20] ss:$0 sps:$4 sm:$0x11]   ;;  %v496_v14 = vrot.slane %v494_v9, 1  ;;  %v501_v15 = vrot.slane %v499_v10, 1  ;;  %v511_v16 = vshll.u32 %v1458_v11, 16 }
  0x2a   : > { %610 = vrot.lane.b32.xlu1 %v1740_v2, %s2075_s20  ;;  %v509_v17 = vor.u32 %v508_v12, %v504_v3  ;;  %v523_v20 = vshll.u32 %v1459_v13, 16  ;;  %v1460_v21 = vld [vmem:[%s1728_s15 + $0x2c] ss:$0 sps:$4 sm:$0x11]   ;;  %v530_v25 = vshll.u32 %v1734_v1, 16  ;;  %v520_v27 = vrot.slane %v518_v19, 1 }
  0x2b   : > { %v497_v22 = vor.u32 %v496_v14, %v492_v8  ;;  %v513_v23 = vrot.slane %v511_v16, 1  ;;  %v535_v29 = vshll.u32 %v1460_v21, 16  ;;  %v1461_v30 = vld [vmem:[%s1728_s15 + $0x38] ss:$0 sps:$4 sm:$0x11]   ;;  %v542_v33 = vshll.u32 %v1750_v6, 16 }
  0x2c   : > { %v525_v28 = vrot.slane %v523_v20, 1  ;;  %v532_v32 = vrot.slane %v530_v25, 1  ;;  %v521_v34 = vor.u32 %v520_v27, %v516_v18  ;;  %v540_v36 = vshrl.u32 %v1750_v6, 16  ;;  %v1463_v41 = vld [vmem:[%s1728_s15 + $0x44] ss:$0 sps:$4 sm:$0x11]  }
  0x2d   : > { %v502_v31 = vsel %vm490_vm0, %v497_v22, %v501_v15  ;;  %v537_v35 = vrot.slane %v535_v29, 1  ;;  %v547_v37 = vshll.u32 %v1461_v30, 16  ;;  %v514_v38 = vsel %vm490_vm0, %v509_v17, %v513_v23  ;;  %v1793_v50 = vld [vmem:[%s1728_s15 + $0x48] sm:$0xff]   ;;  %v1465_v55 = vld [vmem:[%s1728_s15 + $0x50] ss:$0 sps:$4 sm:$0x11]  }
  0x2e   : > { %614 = vrot.lane.b32.xlu1 %v1750_v6, %s2075_s20  ;;  %587 = vrot.lane.b32.xlu0 %v502_v31, %s1600_s9  ;;  %v533_v39 = vor.u32 %v532_v32, %v528_v24  ;;  %v544_v40 = vrot.slane %v542_v33, 1  ;;  %v554_v42 = vshll.u32 %v1773_v26, 16  ;;  %v526_v43 = vsel %vm490_vm0, %v521_v34, %v525_v28  ;;  %v1804_v57 = vld [vmem:[%s1728_s15 + $0x54] sm:$0xff]   ;;  %s1262_s16 = sshll.u32 %s379_s8, 2 }
  0x2f   : > { %v549_v44 = vrot.slane %v547_v37, 1  ;;  %v552_v45 = vshrl.u32 %v1773_v26, 16  ;;  %v559_v49 = vshll.u32 %v1463_v41, 16  ;;  %v566_v56 = vshll.u32 %v1793_v50, 16  ;;  %s381_s20 = scalar_lea.vmem %s2069_s1, %s1262_s16 }
  0x30   : > { %v538_v46 = vsel %vm490_vm0, %v533_v39, %v537_v35  ;;  %v545_v47 = vor.u32 %v544_v40, %v540_v36  ;;  %v556_v48 = vrot.slane %v554_v42, 1  ;;  %v1467_v58 = vld [vmem:[%s1728_s15 + $0x5c] ss:$0 sps:$4 sm:$0x11]   ;;  %v564_v59 = vshrl.u32 %v1793_v50, 16  ;;  %v1468_v10 = vld [vmem:[%s381_s20] sm:$0xff]  }
  0x31   : > { %v561_v54 = vrot.slane %v559_v49, 1  ;;  %v568_v61 = vrot.slane %v566_v56, 1  ;;  %v571_v62 = vshll.u32 %v1465_v55, 16  ;;  %v578_v63 = vshll.u32 %v1804_v57, 16  ;;  %s1263_s15 = sshll.u32 %s1581_s24, 4 }
  0x32   : > { %641 = vrot.lane.b32.xlu1 %v526_v43, %s1601_s10  ;;  %589 = vrot.lane.b32.xlu0 %v514_v38, %s1600_s9  ;;  %v550_v52 = vsel %vm490_vm0, %v545_v47, %v549_v44  ;;  %v557_v53 = vor.u32 %v556_v48, %v552_v45  ;;  %v576_v3 = vshrl.u32 %v1804_v57, 16  ;;  %v583_v9 = vshll.u32 %v1467_v58, 16  ;;  %v1469_v15 = vld [vmem:[%s381_s20 + $0x8] ss:$0 sps:$4 sm:$0x11]   ;;  %p387_p1 = scmp.lt.s32.totalorder %s1263_s15, 31 }
  0x33   : > { %v569_v5 = vor.u32 %v568_v61, %v564_v59  ;;  %v573_v7 = vrot.slane %v571_v62, 1  ;;  %v580_v8 = vrot.slane %v578_v63, 1  ;;  %v630_v14 = vshll.u32 %v1468_v10, 16  ;;  %s1264_s20 = sshll.u32 %s1719_s19, 5  ;;  %s1602_s19 = smov 120  }
  0x34   : > { %v562_v60 = vsel %vm490_vm0, %v557_v53, %v561_v54  ;;  %v585_v13 = vrot.slane %v583_v9, 1  ;;  %v628_v17 = vshrl.u32 %v1468_v10, 16  ;;  %v635_v19 = vshll.u32 %v1469_v15, 16  ;;  %s2101_s15 = smov (!%p387_p1, %s1263_s15), 31 }
  0x35   : > { %v574_v11 = vsel %vm490_vm0, %v569_v5, %v573_v7  ;;  %v581_v12 = vor.u32 %v580_v8, %v576_v3  ;;  %v632_v18 = vrot.slane %v630_v14, 1 }
  0x36   : > { %593 = vrot.lane.b32.xlu1 %v538_v46, %s1600_s9  ;;  %639 = vrot.lane.b32.xlu0 %v514_v38, %s1601_s10  ;;  %v637_v21 = vrot.slane %v635_v19, 1 }
  0x37   : > { %v586_v16 = vsel %vm490_vm0, %v581_v12, %v585_v13  ;;  %v633_v20 = vor.u32 %v632_v18, %v628_v17 }
  0x39   : > { %v638_v22 = vsel %vm490_vm0, %v633_v20, %v637_v21 }
  0x3a   : > { %645 = vrot.lane.b32.xlu1 %v550_v52, %s1601_s10  ;;  %591 = vrot.lane.b32.xlu0 %v526_v43, %s1600_s9 }
  0x3e   : > { %597 = vrot.lane.b32.xlu1 %v562_v60, %s1600_s9  ;;  %643 = vrot.lane.b32.xlu0 %v538_v46, %s1601_s10 }
  0x42   : > { %618 = vrot.lane.b32.xlu1 %v1793_v50, %s2083_s29  ;;  %595 = vrot.lane.b32.xlu0 %v550_v52, %s1600_s9 }
  0x46   : > { %649 = vrot.lane.b32.xlu1 %v574_v11, %s1601_s10  ;;  %616 = vrot.lane.b32.xlu0 %v1773_v26, %s2083_s29 }
  0x4a   : > { %601 = vrot.lane.b32.xlu1 %v586_v16, %s1600_s9  ;;  %647 = vrot.lane.b32.xlu0 %v562_v60, %s1601_s10 }
  0x4e   : > { %622 = vrot.lane.b32.xlu1 %v1468_v10, %s2083_s29  ;;  %599 = vrot.lane.b32.xlu0 %v574_v11, %s1600_s9  ;;  %s390_s9 = sadd.s32 %s1264_s20, %s2101_s15  ;;  %s1604_s15 = smov 104  }
  0x4f   : > { %s1265_s8 = sshll.u32 %s390_s9, 2  ;;  %s1970_s20 = sand.u32 1, %s1573_s22  }
  0x50   : > { %s1888_s14 = scalar_lea.vmem %s2072_s4, %s1265_s8  ;;  %s1310_s9 = sshll.u32 %s1585_s25, 1 }
  0x51   : > { %s343_s8 = scalar_lea.vmem [#allocation2], %s1970_s20  ;;  %s2077_s13 = scalar_lea.vmem [#allocation4], %s1970_s20 }
  0x52   : > { %653 = vrot.lane.b32.xlu1 %v638_v22, %s1601_s10  ;;  %620 = vrot.lane.b32.xlu0 %v1804_v57, %s2083_s29  ;;  %s1603_s29 = smov 112   ;;  %s1068_s16 = sshll.u32 %s343_s8, 4  ;;  %s1983_s16 = int_to_ptr.vmem [resolvable:$true] %s1068_s16 }
  0x53   : > { %s1471_s25 = scalar_lea.vmem %s1983_s16, 16 }
  0x54   : > { %p1472_p2 = scmp.ne.s32.totalorder %s1983_s16, %s1471_s25 }
  0x56   : > { %651 = vrot.lane.b32.xlu0 %v586_v16, %s1601_s10  ;;  %s1061_s10 = sadd.s32 %s1581_s24, %s1310_s9  ;;  %p1473_p3 = pnand %p1472_p2, %p1695_p5 }
  0x57   : > { %s1311_s18 = sshll.u32 %s1061_s10, 4  ;;  %s1046_s10 = scalar_lea.sflag [#allocation3], %s1970_s20 }
  0x58   : > { %s1981_s24 = scalar_lea.hbm %s2073_s5, %s1311_s18  ;;  %s1989_s9 = scalar_lea.hbm %s2074_s6, %s1311_s18 }
  0x59   : > { %p1474_p4 = pneg %p1473_p3 }
  0x98   : > { %v609_v23 = vpop.permute.xlu1 %608  ;;  %v613_v25 = vpop.permute.xlu0 %612 }
  0x9c   : > { %v611_v24 = vpop.permute.xlu1 %610 }
  0xa0   : > { %v615_v27 = vpop.permute.xlu1 %614  ;;  %v588_v28 = vpop.permute.xlu0 %587 }
  0xa1   : > { %v657_v31 = vsel %vm655_vm1, %v1746_v4, %v588_v28 }
  0xa2   : > { %v674_v36 = vsel %vm672_vm2, %v657_v31, %v609_v23 }
  0xa4   : > { %v642_v29 = vpop.permute.xlu1 %641  ;;  %v590_v30 = vpop.permute.xlu0 %589 }
  0xa5   : > { %v659_v32 = vsel %vm655_vm1, %v1731_v0, %v590_v30 }
  0xa6   : > { %v676_v33 = vsel %vm672_vm2, %v659_v32, %v611_v24 }
  0xa7   : > { %v693_v38 = vsel %vm689_vm3, %v676_v33, %v642_v29 }
  0xa8   : > { %v594_v34 = vpop.permute.xlu1 %593  ;;  %v640_v35 = vpop.permute.xlu0 %639 }
  0xa9   : > { %v691_v37 = vsel %vm689_vm3, %v674_v36, %v640_v35  ;;  %v663_v40 = vsel %vm655_vm1, %v1734_v1, %v594_v34 }
  0xaa   : > { %1349 = vmatprep.mubr.msk.bf16.mxu0 %vm721_vm4, %v691_v37  ;;  %v680_v44 = vsel %vm672_vm2, %v663_v40, %v615_v27 }
  0xab   : > { %1350 = vmatmul.mubr.msk.bf16.vlgmr.msra.gmra.mrb[0].mxu0 %vm721_vm4, %v693_v38 }
  0xac   : > { %v646_v4 = vpop.permute.xlu1 %645  ;;  %v592_v39 = vpop.permute.xlu0 %591 }
  0xad   : > { %v661_v0 = vsel %vm655_vm1, %v1740_v2, %v592_v39  ;;  %v697_v46 = vsel %vm689_vm3, %v680_v44, %v646_v4 }
  0xae   : > { %v678_v42 = vsel %vm672_vm2, %v661_v0, %v613_v25 }
  0xb0   : > { %v598_v41 = vpop.permute.xlu1 %597  ;;  %v644_v43 = vpop.permute.xlu0 %643 }
  0xb1   : > { %v695_v45 = vsel %vm689_vm3, %v678_v42, %v644_v43  ;;  %v667_v1 = vsel %vm655_vm1, %v1773_v26, %v598_v41 }
  0xb2   : > { %1353 = vmatprep.mubr.msk.bf16.mxu0 %vm721_vm4, %v695_v45 }
  0xb3   : > { %1354 = vmatmul.mubr.msk.bf16.gmra.mrb[4].mxu0 %vm721_vm4, %v697_v46 }
  0xb4   : > { %v619_v47 = vpop.permute.xlu1 %618  ;;  %v596_v48 = vpop.permute.xlu0 %595 }
  0xb5   : > { %v665_v51 = vsel %vm655_vm1, %v1750_v6, %v596_v48  ;;  %v684_v55 = vsel %vm672_vm2, %v667_v1, %v619_v47 }
  0xb8   : > { %v650_v2 = vpop.permute.xlu1 %649  ;;  %v617_v49 = vpop.permute.xlu0 %616 }
  0xb9   : > { %v682_v53 = vsel %vm672_vm2, %v665_v51, %v617_v49  ;;  %v701_v58 = vsel %vm689_vm3, %v684_v55, %v650_v2 }
  0xbc   : > { %v602_v52 = vpop.permute.xlu1 %601  ;;  %v648_v54 = vpop.permute.xlu0 %647 }
  0xbd   : > { %v699_v56 = vsel %vm689_vm3, %v682_v53, %v648_v54  ;;  %v671_v6 = vsel %vm655_vm1, %v1804_v57, %v602_v52 }
  0xbe   : > { %1357 = vmatprep.mubr.msk.bf16.mxu1 %vm721_vm4, %v699_v56 }
  0xbf   : > { %1358 = vmatmul.mubr.msk.bf16.vlgmr.msra.gmra.mrb[0].mxu1 %vm721_vm4, %v701_v58 }
  0xc0   : > { %v600_v59 = vpop.permute.xlu0 %599  ;;  %v623_v26 = vpop.permute.xlu1 %622 }
  0xc1   : > { %v669_v61 = vsel %vm655_vm1, %v1793_v50, %v600_v59  ;;  %v688_v5 = vsel %vm672_vm2, %v671_v6, %v623_v26  ;;  %v1882_v50 = vld [vmem:[%s2071_s3] ss:$0 sm:$0xff] }
  0xc4   : > { %v621_v60 = vpop.permute.xlu0 %620  ;;  %v654_v62 = vpop.permute.xlu1 %653 }
  0xc5   : > { %v686_v63 = vsel %vm672_vm2, %v669_v61, %v621_v60  ;;  %v705_v8 = vsel %vm689_vm3, %v688_v5, %v654_v62 }
  0xc8   : > { %v652_v3 = vpop.permute.xlu0 %651 }
  0xc9   : > { %v703_v7 = vsel %vm689_vm3, %v686_v63, %v652_v3 }
  0xca   : > { %1361 = vmatprep.mubr.msk.bf16.mxu1 %vm721_vm4, %v703_v7 }
  0xcb   : > { %1362 = vmatmul.mubr.msk.bf16.gmra.mrb[4].mxu1 %vm721_vm4, %v705_v8 }
 0x17e   : > { %v1351_v57 = vpop.f32.mrb[0].mxu0 }
 0x17f   : > { %v781_v9 = vadd.f32 %v1351_v57, %v1882_v50  ;;  %v772_v10 = vpop.f32.mrb[1].mxu0 }
 0x180   : > { %v773_v11 = vadd.f32 %v1882_v50, %v772_v10  ;;  %v1352_v12 = vpop.f32.mrb[2].mxu0 }
 0x181   : > { %v1324_v13 = vpack.c.bf16 %v781_v9, %v781_v9  ;;  %v784_v14 = vadd.f32 %v1352_v12, %v1882_v50  ;;  %v775_v15 = vpop.f32.mrb[3].mxu0  ;;  %v890_v19 = vmul.f32 %v781_v9, %v781_v9  ;;  %v839_v28 = vsel %vm835_vm6, %v781_v9, 0.0 }
 0x182   : > { %v888_v16 = vmul.f32 %v773_v11, %v773_v11  ;;  %v1322_v17 = vpack.c.bf16 %v773_v11, %v773_v11  ;;  %v776_v18 = vadd.f32 %v1882_v50, %v775_v15  ;;  %v836_v21 = vsel %vm835_vm6, %v773_v11, 0.0 }
 0x183   : > { %1022 = vst.msk [vmem:[%s1888_s14 + $0x8] sm:$0xf] %vm1019_vm5, %v1324_v13  ;;  %v1325_v20 = vpack.c.bf16 %v784_v14, %v784_v14  ;;  %v891_v25 = vmul.f32 %v784_v14, %v784_v14  ;;  %v907_v36 = vsel %vm835_vm6, %v890_v19, 0.0  ;;  %v841_v4 = vsel %vm835_vm6, %v784_v14, 0.0 }
 0x184   : > { %1020 = vst.msk [vmem:[%s1888_s14] sm:$0xf] %vm1019_vm5, %v1322_v17  ;;  %v837_v22 = vsel %vm835_vm6, %v776_v18, 0.0  ;;  %v889_v23 = vmul.f32 %v776_v18, %v776_v18  ;;  %v1323_v24 = vpack.c.bf16 %v776_v18, %v776_v18  ;;  %v904_v29 = vsel %vm835_vm6, %v888_v16, 0.0 }
 0x185   : > { %1023 = vst.msk [vmem:[%s1888_s14 + $0xc] sm:$0xf] %vm1019_vm5, %v1325_v20  ;;  %v838_v27 = vadd.f32 %v837_v22, %v836_v21  ;;  %v909_v39 = vsel %vm835_vm6, %v891_v25, 0.0 }
 0x186   : > { %v905_v30 = vsel %vm835_vm6, %v889_v23, 0.0  ;;  %1021 = vst.msk [vmem:[%s1888_s14 + $0x4] sm:$0xf] %vm1019_vm5, %v1323_v24  ;;  %v1355_v31 = vpop.f32.mrb[4].mxu0 }
 0x187   : > { %v840_v32 = vadd.f32 %v839_v28, %v838_v27  ;;  %v906_v33 = vadd.f32 %v905_v30, %v904_v29  ;;  %v797_v34 = vadd.f32 %v1355_v31, %v1882_v50  ;;  %v788_v35 = vpop.f32.mrb[5].mxu0 }
 0x188   : > { %v789_v37 = vadd.f32 %v1882_v50, %v788_v35  ;;  %v1356_v38 = vpop.f32.mrb[6].mxu0 }
 0x189   : > { %v908_v0 = vadd.f32 %v907_v36, %v906_v33  ;;  %v1328_v40 = vpack.c.bf16 %v797_v34, %v797_v34  ;;  %v791_v41 = vpop.f32.mrb[7].mxu0  ;;  %v842_v42 = vadd.f32 %v841_v4, %v840_v32  ;;  %v800_v47 = vadd.f32 %v1356_v38, %v1882_v50 }
 0x18a   : > { %v843_v43 = vsel %vm835_vm6, %v789_v37, 0.0  ;;  %v892_v44 = vmul.f32 %v789_v37, %v789_v37  ;;  %v1326_v45 = vpack.c.bf16 %v789_v37, %v789_v37  ;;  %v792_v48 = vadd.f32 %v1882_v50, %v791_v41 }
 0x18b   : > { %1026 = vst.msk [vmem:[%s1888_s14 + $0x18] sm:$0xf] %vm1019_vm5, %v1328_v40  ;;  %v910_v46 = vadd.f32 %v909_v39, %v908_v0  ;;  %v844_v2 = vadd.f32 %v843_v43, %v842_v42  ;;  %v1329_v51 = vpack.c.bf16 %v800_v47, %v800_v47  ;;  %v894_v52 = vmul.f32 %v797_v34, %v797_v34 }
 0x18c   : > { %v911_v49 = vsel %vm835_vm6, %v892_v44, 0.0  ;;  %1024 = vst.msk [vmem:[%s1888_s14 + $0x10] sm:$0xf] %vm1019_vm5, %v1326_v45  ;;  %v845_v53 = vsel %vm835_vm6, %v792_v48, 0.0  ;;  %v893_v54 = vmul.f32 %v792_v48, %v792_v48  ;;  %v1327_v55 = vpack.c.bf16 %v792_v48, %v792_v48 }
 0x18d   : > { %v912_v1 = vadd.f32 %v911_v49, %v910_v46  ;;  %1027 = vst.msk [vmem:[%s1888_s14 + $0x1c] sm:$0xf] %vm1019_vm5, %v1329_v51  ;;  %v846_v56 = vadd.f32 %v845_v53, %v844_v2  ;;  %v847_v58 = vsel %vm835_vm6, %v797_v34, 0.0  ;;  %v895_v59 = vmul.f32 %v800_v47, %v800_v47 }
 0x18e   : > { %v913_v26 = vsel %vm835_vm6, %v893_v54, 0.0  ;;  %1025 = vst.msk [vmem:[%s1888_s14 + $0x14] sm:$0xf] %vm1019_vm5, %v1327_v55  ;;  %v915_v61 = vsel %vm835_vm6, %v894_v52, 0.0  ;;  %v849_v62 = vsel %vm835_vm6, %v800_v47, 0.0 }
 0x18f   : > { %v848_v60 = vadd.f32 %v847_v58, %v846_v56  ;;  %v914_v6 = vadd.f32 %v913_v26, %v912_v1  ;;  %v917_v57 = vsel %vm835_vm6, %v895_v59, 0.0 }
 0x191   : > { %v916_v3 = vadd.f32 %v915_v61, %v914_v6  ;;  %v850_v8 = vadd.f32 %v849_v62, %v848_v60 }
 0x192   : > { %v1359_v63 = vpop.f32.mrb[0].mxu1 }
 0x193   : > { %v813_v5 = vadd.f32 %v1359_v63, %v1882_v50  ;;  %v804_v7 = vpop.f32.mrb[1].mxu1  ;;  %v918_v12 = vadd.f32 %v917_v57, %v916_v3 }
 0x194   : > { %v805_v9 = vadd.f32 %v1882_v50, %v804_v7  ;;  %v1360_v10 = vpop.f32.mrb[2].mxu1 }
 0x195   : > { %v1332_v11 = vpack.c.bf16 %v813_v5, %v813_v5  ;;  %v807_v13 = vpop.f32.mrb[3].mxu1  ;;  %v816_v17 = vadd.f32 %v1360_v10, %v1882_v50  ;;  %v898_v20 = vmul.f32 %v813_v5, %v813_v5  ;;  %v855_v29 = vsel %vm835_vm6, %v813_v5, 0.0 }
 0x196   : > { %v851_v14 = vsel %vm835_vm6, %v805_v9, 0.0  ;;  %v896_v15 = vmul.f32 %v805_v9, %v805_v9  ;;  %v1330_v16 = vpack.c.bf16 %v805_v9, %v805_v9  ;;  %v808_v19 = vadd.f32 %v1882_v50, %v807_v13 }
 0x197   : > { %1030 = vst.msk [vmem:[%s1888_s14 + $0x28] sm:$0xf] %vm1019_vm5, %v1332_v11  ;;  %v852_v18 = vadd.f32 %v851_v14, %v850_v8  ;;  %v1333_v22 = vpack.c.bf16 %v816_v17, %v816_v17  ;;  %v899_v30 = vmul.f32 %v816_v17, %v816_v17  ;;  %v923_v34 = vsel %vm835_vm6, %v898_v20, 0.0 }
 0x198   : > { %v919_v21 = vsel %vm835_vm6, %v896_v15, 0.0  ;;  %1028 = vst.msk [vmem:[%s1888_s14 + $0x20] sm:$0xf] %vm1019_vm5, %v1330_v16  ;;  %v853_v24 = vsel %vm835_vm6, %v808_v19, 0.0  ;;  %v897_v25 = vmul.f32 %v808_v19, %v808_v19  ;;  %v1331_v27 = vpack.c.bf16 %v808_v19, %v808_v19 }
 0x199   : > { %v920_v23 = vadd.f32 %v919_v21, %v918_v12  ;;  %1031 = vst.msk [vmem:[%s1888_s14 + $0x2c] sm:$0xf] %vm1019_vm5, %v1333_v22  ;;  %v854_v28 = vadd.f32 %v853_v24, %v852_v18  ;;  %v857_v35 = vsel %vm835_vm6, %v816_v17, 0.0  ;;  %v925_v4 = vsel %vm835_vm6, %v899_v30, 0.0 }
 0x19a   : > { %v921_v31 = vsel %vm835_vm6, %v897_v25, 0.0  ;;  %1029 = vst.msk [vmem:[%s1888_s14 + $0x24] sm:$0xf] %vm1019_vm5, %v1331_v27 }
 0x19b   : > { %v856_v32 = vadd.f32 %v855_v29, %v854_v28  ;;  %v922_v33 = vadd.f32 %v921_v31, %v920_v23 }
 0x19d   : > { %v924_v36 = vadd.f32 %v923_v34, %v922_v33  ;;  %v858_v38 = vadd.f32 %v857_v35, %v856_v32 }
 0x19e   : > { %v1363_v37 = vpop.f32.mrb[4].mxu1 }
 0x19f   : > { %v829_v39 = vadd.f32 %v1363_v37, %v1882_v50  ;;  %v820_v0 = vpop.f32.mrb[5].mxu1  ;;  %v926_v41 = vadd.f32 %v925_v4, %v924_v36 }
 0x1a0   : > { %v821_v40 = vadd.f32 %v1882_v50, %v820_v0  ;;  %v1364_v42 = vpop.f32.mrb[6].mxu1 }
 0x1a1   : > { %v1336_v43 = vpack.c.bf16 %v829_v39, %v829_v39  ;;  %v832_v44 = vadd.f32 %v1364_v42, %v1882_v50  ;;  %v823_v45 = vpop.f32.mrb[7].mxu1  ;;  %v902_v49 = vmul.f32 %v829_v39, %v829_v39  ;;  %v863_v59 = vsel %vm835_vm6, %v829_v39, 0.0 }
 0x1a2   : > { %v859_v46 = vsel %vm835_vm6, %v821_v40, 0.0  ;;  %v900_v47 = vmul.f32 %v821_v40, %v821_v40  ;;  %v1334_v48 = vpack.c.bf16 %v821_v40, %v821_v40  ;;  %v824_v2 = vadd.f32 %v1882_v50, %v823_v45 }
 0x1a3   : > { %1034 = vst.msk [vmem:[%s1888_s14 + $0x38] sm:$0xf] %vm1019_vm5, %v1336_v43  ;;  %v860_v1 = vadd.f32 %v859_v46, %v858_v38  ;;  %v1337_v52 = vpack.c.bf16 %v832_v44, %v832_v44  ;;  %v903_v26 = vmul.f32 %v832_v44, %v832_v44  ;;  %v931_v61 = vsel %vm835_vm6, %v902_v49, 0.0 }
 0x1a4   : > { %v927_v51 = vsel %vm835_vm6, %v900_v47, 0.0  ;;  %1032 = vst.msk [vmem:[%s1888_s14 + $0x30] sm:$0xf] %vm1019_vm5, %v1334_v48  ;;  %v861_v53 = vsel %vm835_vm6, %v824_v2, 0.0  ;;  %v901_v54 = vmul.f32 %v824_v2, %v824_v2  ;;  %v1335_v58 = vpack.c.bf16 %v824_v2, %v824_v2 }
 0x1a5   : > { %v928_v55 = vadd.f32 %v927_v51, %v926_v41  ;;  %v862_v56 = vadd.f32 %v861_v53, %v860_v1  ;;  %1035 = vst.msk [vmem:[%s1888_s14 + $0x3c] sm:$0xf] %vm1019_vm5, %v1337_v52  ;;  %v865_v62 = vsel %vm835_vm6, %v832_v44, 0.0  ;;  %v933_v5 = vsel %vm835_vm6, %v903_v26, 0.0 }
 0x1a6   : > { %v929_v50 = vsel %vm835_vm6, %v901_v54, 0.0  ;;  %1033 = vst.msk [vmem:[%s1888_s14 + $0x34] sm:$0xf] %vm1019_vm5, %v1335_v58  ;;  %s1083_s14 = sshll.u32 %s2077_s13, 4  ;;  %s1991_s14 = int_to_ptr.vmem [resolvable:$true] %s1083_s14 }
 0x1a7   : > { %v864_v60 = vadd.f32 %v863_v59, %v862_v56  ;;  %v930_v6 = vadd.f32 %v929_v50, %v928_v55 }
 0x1a9   : > { %v866_v63 = vadd.f32 %v865_v62, %v864_v60  ;;  %v932_v3 = vadd.f32 %v931_v61, %v930_v6 }
 0x1ab   : > { %v867_v7 = vrot.slane %v866_v63, 4  ;;  %v934_v8 = vadd.f32 %v933_v5, %v932_v3 }
 0x1ad   : > { %v868_v57 = vadd.f32 %v867_v7, %v866_v63  ;;  %v935_v9 = vrot.slane %v934_v8, 4 }
 0x1af   : > { %v869_v10 = vrot.slane %v868_v57, 2  ;;  %v936_v11 = vadd.f32 %v935_v9, %v934_v8 }
 0x1b1   : > { %v870_v12 = vadd.f32 %v869_v10, %v868_v57  ;;  %v937_v13 = vrot.slane %v936_v11, 2 }
 0x1b3   : > { %v871_v14 = vrot.slane %v870_v12, 1  ;;  %v938_v15 = vadd.f32 %v937_v13, %v936_v11 }
 0x1b5   : > { %v872_v16 = vadd.f32 %v871_v14, %v870_v12  ;;  %v939_v17 = vrot.slane %v938_v15, 1 }
 0x1b7   : > { %874 = vrot.lane.b32.xlu0 %v872_v16, %s1602_s19  ;;  %v940_v18 = vadd.f32 %v939_v17, %v938_v15 }
 0x1b9   : > { %942 = vrot.lane.b32.xlu1 %v940_v18, %s1602_s19  ;;  %s1605_s19 = smov [#allocation2]  }
 0x1ba   : > { %s1475_s13 = sshll.u32 %s1605_s19, 4  ;;  %s1476_s13 = int_to_ptr.vmem [resolvable:$false] %s1475_s13 }
 0x1bb   : > { %878 = vrot.lane.b32.xlu0 %v872_v16, %s1603_s29  ;;  %s1477_s0 = scalar_lea.vmem %s1476_s13, 32  ;;  %p1478_p6 = scmp.lt.s32.totalorder %s1983_s16, %s1476_s13 }
 0x1bc   : > { %p1479_p8 = scmp.lt.s32.totalorder %s1477_s0, %s1471_s25 }
 0x1bd   : > { %946 = vrot.lane.b32.xlu1 %v940_v18, %s1603_s29 }
 0x1be   : > { %p1480_p9 = por %p1479_p8, %p1478_p6 }
 0x1bf   : > { %882 = vrot.lane.b32.xlu0 %v872_v16, %s1604_s15 }
 0x1c0   : > { %p1481_p10 = pnand %p1480_p9, %p1474_p4 }
 0x1c1   : > { %950 = vrot.lane.b32.xlu1 %v940_v18, %s1604_s15 }
 0x229   : > { %v875_v19 = vpop.permute.xlu0 %874 }
 0x22a   : > { %v877_v22 = vadd.f32 %v875_v19, %v872_v16 }
 0x22b   : > { %v943_v20 = vpop.permute.xlu1 %942 }
 0x22c   : > { %v945_v24 = vadd.f32 %v943_v20, %v940_v18 }
 0x22d   : > { %v879_v21 = vpop.permute.xlu0 %878 }
 0x22e   : > { %v881_v25 = vadd.f32 %v879_v21, %v877_v22 }
 0x22f   : > { %v947_v23 = vpop.permute.xlu1 %946 }
 0x230   : > { %v949_v28 = vadd.f32 %v947_v23, %v945_v24 }
 0x231   : > { %v883_v27 = vpop.permute.xlu0 %882 }
 0x232   : > { %v885_v29 = vadd.f32 %v883_v27, %v881_v25 }
 0x233   : > { %v951_v30 = vpop.permute.xlu1 %950 }
 0x234   : > { %v953_v31 = vadd.f32 %v951_v30, %v949_v28  ;;  %887 = vst.msk [vmem:[%s343_s8] sm:$0x1] %vm886_vm7, %v885_v29 }
 0x235   : > { %1484 = shalt.err (!%p1481_p10)
}
 0x236   : > { %s1485_s18 = scalar_lea.hbm %s1981_s24, 16  ;;  %s1489_s15 = scalar_lea.hbm %s2073_s5, 64 }
 0x237   : > { %p1486_p11 = scmp.ne.s32.totalorder %s1981_s24, %s1485_s18  ;;  %p1490_p0 = scmp.lt.u32.totalorder %s1981_s24, %s2073_s5 }
 0x238   : > { %p1491_p1 = scmp.lt.u32.totalorder %s1489_s15, %s1485_s18  ;;  %p1493_p3 = scmp.lt.u32.totalorder %s1485_s18, %s1981_s24 }
 0x239   : > { %p1487_p12 = pnand %p1486_p11, %p1695_p5 }
 0x23a   : > { %p1492_p2 = por %p1491_p1, %p1490_p0 }
 0x23b   : > { %p1488_p13 = pneg %p1487_p12 }
 0x23c   : > { %p1494_p4 = por %p1493_p3, %p1492_p2 }
 0x23e   : > { %p1495_p6 = pnand %p1494_p4, %p1488_p13 }
 0x240   : > { %1498 = shalt.err (!%p1495_p6)
}
 0x241   : > { %1370 = dma.vmem_to_hbm [thread:$0]  (%p1695_p5), %s1983_s16, 16, %s1981_s24, %s1046_s10  }
 0x242   : > { %s2084_s0 = scalar_lea.vmem [#allocation4], %s1970_s20  ;;  %s1050_s25 = scalar_lea.sflag [#allocation5], %s1970_s20 }
 0x243   : > { %954 = vst.msk [vmem:[%s2084_s0] sm:$0x1] %vm886_vm7, %v953_v31  ;;  %s1499_s8 = scalar_lea.vmem %s1991_s14, 16  ;;  %s1606_s18 = smov [#allocation4]  }
 0x244   : > { %p1500_p8 = scmp.ne.s32.totalorder %s1991_s14, %s1499_s8  ;;  %s1503_s29 = sshll.u32 %s1606_s18, 4  ;;  %s1504_s29 = int_to_ptr.vmem [resolvable:$false] %s1503_s29 }
 0x245   : > { %s1505_s15 = scalar_lea.vmem %s1504_s29, 32  ;;  %p1506_p11 = scmp.lt.s32.totalorder %s1991_s14, %s1504_s29 }
 0x246   : > { %p1501_p9 = pnand %p1500_p8, %p1695_p5  ;;  %p1507_p12 = scmp.lt.s32.totalorder %s1505_s15, %s1499_s8 }
 0x248   : > { %p1502_p10 = pneg %p1501_p9  ;;  %p1508_p13 = por %p1507_p12, %p1506_p11 }
 0x24a   : > { %p1509_p0 = pnand %p1508_p13, %p1502_p10 }
 0x24c   : > { %1512 = shalt.err (!%p1509_p0)
}
 0x24d   : > { %s1513_s20 = scalar_lea.hbm %s1989_s9, 16  ;;  %s1517_s10 = scalar_lea.hbm %s2074_s6, 64 }
 0x24e   : > { %p1514_p1 = scmp.ne.s32.totalorder %s1989_s9, %s1513_s20  ;;  %p1518_p4 = scmp.lt.u32.totalorder %s1989_s9, %s2074_s6 }
 0x24f   : > { %p1519_p6 = scmp.lt.u32.totalorder %s1517_s10, %s1513_s20  ;;  %p1521_p9 = scmp.lt.u32.totalorder %s1513_s20, %s1989_s9 }
 0x250   : > { %p1515_p2 = pnand %p1514_p1, %p1695_p5 }
 0x251   : > { %p1520_p8 = por %p1519_p6, %p1518_p4 }
 0x252   : > { %p1516_p3 = pneg %p1515_p2 }
 0x253   : > { %p1522_p10 = por %p1521_p9, %p1520_p8 }
 0x255   : > { %p1523_p11 = pnand %p1522_p10, %p1516_p3 }
 0x257   : > { %1526 = shalt.err (!%p1523_p11)
}
 0x258   : > { %1371 = dma.vmem_to_hbm [thread:$0]  (%p1695_p5), %s1991_s14, 16, %s1989_s9, %s1050_s25  }
 0x259 PF: > { %p1381_p12 = scmp.ge.s32.totalorder %s1597_s28, 2  ;;  %s1107_s0 = sand.u32 1, %s1569_s21  }
 0x25a   : > { %s1108_s8 = scalar_lea.sflag [#allocation3], %s1107_s0 }
 0x25b   : > { %p1375_p13 = pnand %p1381_p12, %p1701_p7 }
 0x25d   : > { %1560 = dma.done.wait (!%p1375_p13), %s1108_s8, 16  }
 0x25e   : > { %1562 = vsyncadd (!%p1375_p13), %s1108_s8, 4294967280  ;;  %s1116_s18 = scalar_lea.sflag [#allocation5], %s1107_s0 }
 0x25f   : > { %1564 = dma.done.wait (!%p1375_p13), %s1116_s18, 16  }
 0x260   : > { %1566 = vsyncadd (!%p1375_p13), %s1116_s18, 4294967280  ;;  %s23_s28 = sadd.s32 1, %s1597_s28   ;;  %s2085_s21 = smov %s1573_s22 }
 0x261   : > { %p20_p0 = scmp.ge.s32.totalorder %s23_s28, 6   ;;  %s2086_s22 = smov %s1577_s23 }
 0x262   : > { %s2087_s23 = smov %s1711_s17  ;;  %s2088_s24 = smov %s1589_s26 }
 0x263   : > { %s2089_s25 = smov %s1593_s27  ;;  %s2090_s26 = smov %s2093_s30 }
 0x264   : > { %s2091_s27 = smov %s2097_s7  ;;  %22 = sbr.rel (!%p20_p0) target bundleno = 9 (0x9), region = 103 }
 0x26b   :  { %1120 = vsyncpa [#allocation3], 1 }
 0x26c   :  { %1122 = vsyncpa [#allocation3 + $0x1], 1 }
 0x26d   :  { %1123 = vsyncpa [#allocation5], 1 }
 0x26e   :  { %1125 = vsyncpa [#allocation5 + $0x1], 1 }

</bundles_post_ra>
